<compile_context>
chip_gen: v7x
topology: tpu7x:2x2x1
jax: 0.10.0
libtpu: 0.0.40
codegen_flags: <defaults>
</compile_context>

<pallas_src>
import jax
import jax.numpy as jnp
from jax.experimental import pallas as pl
from jax.experimental.pallas import tpu as pltpu

_LANE_CAP = 2048          # max lane-dense width (multiple of 128)
_BLOCK_BYTES = 4 << 20    # ~4 MiB per block -> 4 buffers ~= 16 MiB VMEM
_VMEM_LIMIT = 32 << 20    # compiles on every generation (v5e default is 16 MiB)
_SPLIT_BYTES = 2 << 20    # above this, force >= 4 grid steps (v7x megacore)

_SUB_BYTE_PREFIXES = ("int4", "uint4", "int2", "uint2", "float4")


def _identity_kernel(x_ref, o_ref):
    # Elementwise identity on the current VMEM tile.
    o_ref[...] = x_ref[...]


def _pick_lane_width(n):
    """Largest multiple-of-128 divisor of n, capped at _LANE_CAP (0 if none)."""
    for d in range(_LANE_CAP, 127, -128):
        if n % d == 0:
            return d
    return 0


def _copy_2d(x2, tr, bytes_accessed):
    r, tc = x2.shape
    return pl.pallas_call(
        _identity_kernel,
        out_shape=jax.ShapeDtypeStruct((r, tc), x2.dtype),
        grid=(pl.cdiv(r, tr),),
        in_specs=[pl.BlockSpec((tr, tc), lambda i: (i, 0))],
        out_specs=pl.BlockSpec((tr, tc), lambda i: (i, 0)),
        compiler_params=pltpu.CompilerParams(
            dimension_semantics=("parallel",),
            vmem_limit_bytes=_VMEM_LIMIT,
        ),
        cost_estimate=pl.CostEstimate(
            flops=0, transcendentals=0, bytes_accessed=bytes_accessed),
    )(x2)


def identity_pallas(x):
    """Identity forward pass: returns an array equal to x (same shape/dtype)."""
    orig_shape = x.shape
    n = x.size
    if n == 0:
        return x
    if any(x.dtype.name.startswith(p) for p in _SUB_BYTE_PREFIXES):
        # Sub-byte packed dtypes: byte/tile math below doesn't apply; bypass.
        # TODO(synk): add a packed-dtype copy path if ever needed.
        return x

    itemsize = jnp.dtype(x.dtype).itemsize
    flat = x.reshape(-1)

    # Lane-dense width: prefer an exact multiple-of-128 divisor of n so the
    # reshape is free (no pre-pad, no post-slice -> no extra HBM passes).
    tc = _pick_lane_width(n)
    padded = tc == 0
    if padded:
        # No 128-aligned factor (odd sizes): pad the flat array to whole lane
        # rows, copy, slice back.  Extra traffic is bounded (< one row).
        tc = _LANE_CAP if n >= _LANE_CAP else ((n + 127) // 128) * 128
    r = (n + tc - 1) // tc
    n_pad = r * tc
    if padded and n_pad != n:
        flat = jnp.pad(flat, (0, n_pad - n))
    x2 = flat.reshape(r, tc)

    total_bytes = n_pad * itemsize
    tr_target = max(8, (_BLOCK_BYTES // (tc * itemsize)) // 8 * 8)
    if total_bytes >= _SPLIT_BYTES:
        # >= 4 grid steps so the "parallel" axis shards across v7x's 2 TCs;
        # measured-neutral on single-TC v5e/v6e.  (r >= 64 here.)
        quarter = ((r + 3) // 4 + 7) // 8 * 8
        tr = max(8, min(tr_target, quarter))
        # Partial final block (if r % tr != 0) is masked by Pallas: block
        # shape stays (tr, tc) so the (8,128) rule is still satisfied.
    else:
        tr = r  # single full-extent block (second-last dim == full array dim)

    out = _copy_2d(x2, tr, bytes_accessed=2 * total_bytes)

    if padded and n_pad != n:
        out = out.reshape(-1)[:n]
    return out.reshape(orig_shape)


if __name__ == "__main__":
    key = jax.random.PRNGKey(0)

    # Small NCHW-like input (divisor path: tc = 2048, single block, no pad).
    x = jax.random.normal(key, (2, 4, 16, 16), dtype=jnp.float32)
    y = jax.block_until_ready(identity_pallas(x))
    assert y.shape == x.shape and y.dtype == x.dtype
    assert bool(jnp.array_equal(y, x))

    # Odd, non-divisible size to exercise the bounded pad/slice fallback.
    x2 = jax.random.normal(jax.random.PRNGKey(0), (3, 5, 7), dtype=jnp.float32)
    y2 = jax.block_until_ready(identity_pallas(x2))
    assert y2.shape == x2.shape and y2.dtype == x2.dtype
    assert bool(jnp.array_equal(y2, x2))

    # Medium tensor (>= 2 MiB) to exercise the multi-step grid with a masked
    # partial final row-block (r = 300, tr = 80 -> 4 steps, last one partial).
    x3 = jax.random.normal(jax.random.PRNGKey(0), (300, 2048), dtype=jnp.float32)
    y3 = jax.block_until_ready(identity_pallas(x3))
    assert y3.shape == x3.shape and y3.dtype == x3.dtype
    assert bool(jnp.array_equal(y3, x3))

    print("KERNEL_OK")
</pallas_src>

<mosaic_0001>
module attributes {stable_mosaic.version = 11 : i64} {
  func.func @_identity_kernel(%arg0: i32, %arg1: memref<1x2048xf32, #tpu.memory_space<vmem>>, %arg2: memref<1x2048xf32, #tpu.memory_space<vmem>>) attributes {dimension_semantics = [#tpu.dimension_semantics<parallel>], iteration_bounds = array<i64: 1>, scalar_prefetch = 0 : i64, scratch_operands = 0 : i64, tpu.core_type = #tpu.core_type<tc>, window_params = [{transform_indices = @transform_0, window_bounds = array<i64: 1, 2048>}, {transform_indices = @transform_1, window_bounds = array<i64: 1, 2048>}]} {
    %c0 = arith.constant 0 : index
    %c0_0 = arith.constant 0 : index
    %0 = vector.load %arg1[%c0, %c0_0] : memref<1x2048xf32, #tpu.memory_space<vmem>>, vector<1x2048xf32>
    %c0_1 = arith.constant 0 : index
    %c0_2 = arith.constant 0 : index
    %1 = vector.load %arg2[%c0_1, %c0_2] : memref<1x2048xf32, #tpu.memory_space<vmem>>, vector<1x2048xf32>
    tpu.vector_store %arg2[%c0_1, %c0_2], %0 {strides = array<i32>} : memref<1x2048xf32, #tpu.memory_space<vmem>>, vector<1x2048xf32>,
    return
  }
  func.func @transform_0(%arg0: i32) -> (i32, i32) {
    %c0_i32 = arith.constant 0 : i32
    %c0_i32_0 = arith.constant 0 : i32
    return %arg0, %c0_i32 : i32, i32
  }
  func.func @transform_1(%arg0: i32) -> (i32, i32) {
    %c0_i32 = arith.constant 0 : i32
    %c0_i32_0 = arith.constant 0 : i32
    return %arg0, %c0_i32 : i32, i32
  }
}

</mosaic_0001>

<bundles_post_ra>
// kernel: tpu_custom_call.1
= control target key start
LH: loop header
LB: loop body
LE: loop exit
PB: predicated region body
PF: predicated region fallthrough
CT: control target
= control target key end

     0   :  { %6 = vsyncpa [#allocation3], 0  ;;  %s126_s0 = inlined_call_operand.hbm [shape: f32[1,2048], index: 0, kind: input, shape index: {}]   ;;  %s127_s1 = inlined_call_operand.hbm [shape: f32[1,2048], index: 1, kind: output, shape index: {}]  }
   0x1   :  { %7 = vsyncpa [#allocation4], 0  ;;  %s90_s6 = smov [#allocation2]   ;;  %s42_s10 = scalar_lea.hbm %s126_s0, 256 }
   0x2   :  { %s14_s7 = sshll.u32 %s90_s6, 4  ;;  %p43_p0 = scmp.ne.s32.totalorder %s126_s0, %s42_s10  ;;  %s15_s7 = int_to_ptr.vmem [resolvable:$true] %s14_s7 }
   0x3   :  { %p46_p1 = scmp.lt.u32.totalorder %s42_s10, %s126_s0 }
   0x5   :  { %p48_p2 = pnand %p46_p1, %p43_p0 }
   0x7   :  { %51 = shalt.err (!%p48_p2)
}
   0x8   :  { %s52_s15 = scalar_lea.vmem %s15_s7, 256  ;;  %p57_p4 = scmp.lt.s32.totalorder %s15_s7, %s15_s7 }
   0x9   :  { %p53_p3 = scmp.ne.s32.totalorder %s15_s7, %s52_s15  ;;  %p58_p5 = scmp.lt.s32.totalorder %s52_s15, %s52_s15 }
   0xb   :  { %p59_p6 = por %p58_p5, %p57_p4 }
   0xd   :  { %p60_p7 = pnand %p59_p6, %p53_p3 }
   0xf   :  { %63 = shalt.err (!%p60_p7)
}
  0x10   :  { %17 = dma.hbm_to_vmem [thread:$0]  %s126_s0, 256, %s15_s7, [#allocation3]  }
  0x11   :  { %86 = dma.done.wait [#allocation3], 256  }
  0x12   :  { %87 = vsyncadd [#allocation3], 4294967040  ;;  %s91_s18 = smov [#allocation5]   ;;  %v21_v0 = vld [vmem:[#allocation2] sm:$0xff]  ;;  %v22_v1 = vld [vmem:[#allocation2 + $0x8] sm:$0xff] }
  0x13   :  { %s31_s19 = sshll.u32 %s91_s18, 4  ;;  %23 = vst [vmem:[#allocation5] sm:$0xff] %v21_v0  ;;  %24 = vst [vmem:[#allocation5 + $0x8] sm:$0xff] %v22_v1  ;;  %s32_s19 = int_to_ptr.vmem [resolvable:$true] %s31_s19 }
  0x14   :  { %s64_s20 = scalar_lea.vmem %s32_s19, 256  ;;  %p69_p9 = scmp.lt.s32.totalorder %s32_s19, %s32_s19 }
  0x15   :  { %p65_p8 = scmp.ne.s32.totalorder %s32_s19, %s64_s20  ;;  %p70_p10 = scmp.lt.s32.totalorder %s64_s20, %s64_s20 }
  0x17   :  { %p71_p11 = por %p70_p10, %p69_p9 }
  0x19   :  { %p72_p12 = pnand %p71_p11, %p65_p8 }
  0x1b   :  { %75 = shalt.err (!%p72_p12)
}
  0x1c   :  { %s76_s0 = scalar_lea.hbm %s127_s1, 256 }
  0x1d   :  { %p77_p13 = scmp.ne.s32.totalorder %s127_s1, %s76_s0  ;;  %p80_p0 = scmp.lt.u32.totalorder %s76_s0, %s127_s1 }
  0x1f   :  { %p82_p1 = pnand %p80_p0, %p77_p13 }
  0x21   :  { %85 = shalt.err (!%p82_p1)
}
  0x22   :  { %34 = dma.vmem_to_hbm [thread:$0]  %s32_s19, 256, %s127_s1, [#allocation4]  }
  0x23   :  { %88 = dma.done.wait [#allocation4], 256  }
  0x24   :  { %89 = vsyncadd [#allocation4], 4294967040 }
  0x25   :  { %38 = vsyncpa [#allocation3], 1 }
  0x26   :  { %39 = vsyncpa [#allocation4], 1 }

</bundles_post_ra>
